<compile_context>
chip_gen: v5e
topology: v5e:2x2
jax: 0.10.0
libtpu: 0.0.40
codegen_flags: <defaults>
</compile_context>

<pallas_src>
import functools

import jax
import jax.numpy as jnp
import numpy as np
from jax.experimental import pallas as pl
from jax.experimental.pallas import tpu as pltpu


def _instance_norm_kernel(x_ref, g_ref, b_ref, o_ref, *, eps):
    # x_ref: [TB, HW] (one block of (n, c) instances, full spatial extent)
    # g_ref, b_ref: [TB, 1] per-row affine params (weight/bias broadcast over N)
    x = x_ref[...].astype(jnp.float32)
    hw = x.shape[-1]
    mean = jnp.mean(x, axis=-1, keepdims=True)
    xc = x - mean
    # Unbiased variance (ddof=1) to match torch.Tensor.std default.
    var = jnp.sum(xc * xc, axis=-1, keepdims=True) * (1.0 / (hw - 1))
    inv = 1.0 / (jnp.sqrt(var) + eps)          # eps added to std (as in the module)
    o_ref[...] = (xc * inv * g_ref[...] + b_ref[...]).astype(o_ref.dtype)


def _choose_block_rows(nc, hw, dtype_bytes=4, target_bytes=2 << 20):
    """Row-block size: multiple of 8 (sublane), <= ~2 MiB per buffered block."""
    tb = (target_bytes // max(1, hw * dtype_bytes)) // 8 * 8
    tb = int(max(8, min(512, tb)))
    nc8 = ((nc + 7) // 8) * 8
    return min(tb, nc8)


def instance_norm_2d(x, weight, bias, eps=1e-5):
    """x: [N, C, H, W]; weight/bias: [C] (or any shape with C elements)."""
    N, C, H, W = x.shape
    HW = H * W
    NC = N * C

    xf = x.reshape(NC, HW)
    w = weight.reshape(C).astype(x.dtype)
    b = bias.reshape(C).astype(x.dtype)
    # Broadcast channel affine params over the batch -> one value per row.
    gamma = jnp.broadcast_to(w[None, :], (N, C)).reshape(NC, 1)
    beta = jnp.broadcast_to(b[None, :], (N, C)).reshape(NC, 1)

    TB = _choose_block_rows(NC, HW, dtype_bytes=x.dtype.itemsize)
    num_blocks = pl.cdiv(NC, TB)
    NC_pad = num_blocks * TB
    if NC_pad != NC:
        pad = NC_pad - NC
        xf = jnp.pad(xf, ((0, pad), (0, 0)))
        gamma = jnp.pad(gamma, ((0, pad), (0, 0)))
        beta = jnp.pad(beta, ((0, pad), (0, 0)))

    itemsize = x.dtype.itemsize
    cost = pl.CostEstimate(
        flops=int(7 * NC_pad * HW),
        transcendentals=int(2 * NC_pad),          # sqrt + reciprocal per row
        bytes_accessed=int(2 * NC_pad * HW * itemsize + 2 * NC_pad * itemsize),
    )

    out = pl.pallas_call(
        functools.partial(_instance_norm_kernel, eps=float(eps)),
        out_shape=jax.ShapeDtypeStruct((NC_pad, HW), x.dtype),
        grid_spec=pltpu.PrefetchScalarGridSpec(
            num_scalar_prefetch=0,
            grid=(num_blocks,),
            in_specs=[
                pl.BlockSpec((TB, HW), lambda i: (i, 0)),
                pl.BlockSpec((TB, 1), lambda i: (i, 0)),
                pl.BlockSpec((TB, 1), lambda i: (i, 0)),
            ],
            out_specs=pl.BlockSpec((TB, HW), lambda i: (i, 0)),
        ),
        compiler_params=pltpu.CompilerParams(
            dimension_semantics=("parallel",),
        ),
        cost_estimate=cost,
    )(xf, gamma, beta)

    return out[:NC].reshape(N, C, H, W)


def instance_norm_2d_ref(x, weight, bias, eps=1e-5):
    """Pure-JAX reference matching the PyTorch module."""
    N, C, H, W = x.shape
    xf = x.reshape(N, C, -1)
    mean = xf.mean(-1, keepdims=True)
    std = jnp.std(xf, axis=-1, keepdims=True, ddof=1)   # unbiased, like torch .std()
    out = (xf - mean) / (std + eps) * weight.reshape(1, C, 1) + bias.reshape(1, C, 1)
    return out.reshape(N, C, H, W)


if __name__ == "__main__":
    key = jax.random.PRNGKey(0)
    k_x, k_w, k_b = jax.random.split(key, 3)

    N, C, H, W = 2, 4, 16, 16
    x = jax.random.normal(k_x, (N, C, H, W), jnp.float32)
    # Module init is weight=1, bias=0; perturb so the affine path is actually tested.
    weight = 1.0 + 0.1 * jax.random.normal(k_w, (C,), jnp.float32)
    bias = 0.1 * jax.random.normal(k_b, (C,), jnp.float32)

    out = instance_norm_2d(x, weight, bias, eps=1e-5)
    out = jax.block_until_ready(out)

    ref = instance_norm_2d_ref(x, weight, bias, eps=1e-5)
    assert out.shape == (N, C, H, W), out.shape
    np.testing.assert_allclose(np.asarray(out), np.asarray(ref), rtol=2e-5, atol=2e-5)

    print("KERNEL_OK")
</pallas_src>

<mosaic_0001>
module attributes {stable_mosaic.version = 11 : i64} {
  func.func @_instance_norm_kernel(%arg0: i32, %arg1: memref<8x256xf32, #tpu.memory_space<vmem>>, %arg2: memref<8x1xf32, #tpu.memory_space<vmem>>, %arg3: memref<8x1xf32, #tpu.memory_space<vmem>>, %arg4: memref<8x256xf32, #tpu.memory_space<vmem>>) attributes {dimension_semantics = [#tpu.dimension_semantics<parallel>], iteration_bounds = array<i64: 1>, scalar_prefetch = 0 : i64, scratch_operands = 0 : i64, tpu.core_type = #tpu.core_type<tc>, window_params = [{transform_indices = @transform_0, window_bounds = array<i64: 8, 256>}, {transform_indices = @transform_1, window_bounds = array<i64: 8, 1>}, {transform_indices = @transform_2, window_bounds = array<i64: 8, 1>}, {transform_indices = @transform_3, window_bounds = array<i64: 8, 256>}]} {
    %c0 = arith.constant 0 : index
    %c0_0 = arith.constant 0 : index
    %0 = vector.load %arg1[%c0, %c0_0] : memref<8x256xf32, #tpu.memory_space<vmem>>, vector<8x256xf32>
    %cst = arith.constant dense<0.000000e+00> : vector<8xf32>
    %1 = vector.multi_reduction <add>, %0, %cst [1] : vector<8x256xf32> to vector<8xf32>
    %2 = vector.shape_cast %1 : vector<8xf32> to vector<8x1xf32>
    %cst_1 = arith.constant 2.560000e+02 : f32
    %3 = vector.broadcast %cst_1 : f32 to vector<8x1xf32>
    %4 = arith.divf %2, %3 : vector<8x1xf32>
    %5 = vector.broadcast %4 : vector<8x1xf32> to vector<8x256xf32>
    %6 = arith.subf %0, %5 : vector<8x256xf32>
    %7 = arith.mulf %6, %6 : vector<8x256xf32>
    %cst_2 = arith.constant dense<0.000000e+00> : vector<8xf32>
    %8 = vector.multi_reduction <add>, %7, %cst_2 [1] : vector<8x256xf32> to vector<8xf32>
    %9 = vector.shape_cast %8 : vector<8xf32> to vector<8x1xf32>
    %cst_3 = arith.constant 0.00392156886 : f32
    %10 = vector.broadcast %cst_3 : f32 to vector<8x1xf32>
    %11 = arith.mulf %9, %10 : vector<8x1xf32>
    %12 = math.sqrt %11 : vector<8x1xf32>
    %cst_4 = arith.constant 9.99999974E-6 : f32
    %13 = vector.broadcast %cst_4 : f32 to vector<8x1xf32>
    %14 = arith.addf %12, %13 : vector<8x1xf32>
    %cst_5 = arith.constant 1.000000e+00 : f32
    %15 = vector.broadcast %cst_5 : f32 to vector<8x1xf32>
    %16 = arith.divf %15, %14 : vector<8x1xf32>
    %17 = vector.broadcast %16 : vector<8x1xf32> to vector<8x256xf32>
    %18 = arith.mulf %6, %17 : vector<8x256xf32>
    %c0_6 = arith.constant 0 : index
    %c0_7 = arith.constant 0 : index
    %19 = vector.load %arg2[%c0_6, %c0_7] : memref<8x1xf32, #tpu.memory_space<vmem>>, vector<8x1xf32>
    %20 = vector.broadcast %19 : vector<8x1xf32> to vector<8x256xf32>
    %21 = arith.mulf %18, %20 : vector<8x256xf32>
    %c0_8 = arith.constant 0 : index
    %c0_9 = arith.constant 0 : index
    %22 = vector.load %arg3[%c0_8, %c0_9] : memref<8x1xf32, #tpu.memory_space<vmem>>, vector<8x1xf32>
    %23 = vector.broadcast %22 : vector<8x1xf32> to vector<8x256xf32>
    %24 = arith.addf %21, %23 : vector<8x256xf32>
    %c0_10 = arith.constant 0 : index
    %c0_11 = arith.constant 0 : index
    %25 = vector.load %arg4[%c0_10, %c0_11] : memref<8x256xf32, #tpu.memory_space<vmem>>, vector<8x256xf32>
    tpu.vector_store %arg4[%c0_10, %c0_11], %24 {strides = array<i32>} : memref<8x256xf32, #tpu.memory_space<vmem>>, vector<8x256xf32>,
    return
  }
  func.func @transform_0(%arg0: i32) -> (i32, i32) {
    %c0_i32 = arith.constant 0 : i32
    %c0_i32_0 = arith.constant 0 : i32
    return %arg0, %c0_i32 : i32, i32
  }
  func.func @transform_1(%arg0: i32) -> (i32, i32) {
    %c0_i32 = arith.constant 0 : i32
    %c0_i32_0 = arith.constant 0 : i32
    return %arg0, %c0_i32 : i32, i32
  }
  func.func @transform_2(%arg0: i32) -> (i32, i32) {
    %c0_i32 = arith.constant 0 : i32
    %c0_i32_0 = arith.constant 0 : i32
    return %arg0, %c0_i32 : i32, i32
  }
  func.func @transform_3(%arg0: i32) -> (i32, i32) {
    %c0_i32 = arith.constant 0 : i32
    %c0_i32_0 = arith.constant 0 : i32
    return %arg0, %c0_i32 : i32, i32
  }
}

</mosaic_0001>

<bundles_post_ra>
// kernel: tpu_custom_call.1
= control target key start
LH: loop header
LB: loop body
LE: loop exit
PB: predicated region body
PF: predicated region fallthrough
CT: control target
= control target key end

     0   :  { %s175_s0 = inlined_call_operand.vmem [shape: f32[8,256], index: 0, kind: input, shape index: {}]   ;;  %s176_s1 = inlined_call_operand.vmem [shape: f32[8,1], index: 1, kind: input, shape index: {}]   ;;  %s177_s2 = inlined_call_operand.vmem [shape: f32[8,1], index: 2, kind: input, shape index: {}]   ;;  %s178_s3 = inlined_call_operand.hbm [shape: f32[8,256], index: 3, kind: output, shape index: {}]  }
   0x1   :  { %v15_v0 = vld [vmem:[%s175_s0] sm:$0xff]  ;;  %v16_v1 = vld [vmem:[%s175_s0 + $0x8] sm:$0xff] }
   0x2   :  { %8 = vsyncpa [#allocation3], 0  ;;  %v17_v2 = vadd.f32 %v16_v1, %v15_v0  ;;  %v137_v3 = vmov 256.0   ;;  %v66_v4 = vld [vmem:[%s176_s1] sm:$0xff]  ;;  %v138_v5 = vmov 0   ;;  %s139_s0 = smov [#allocation2]  }
   0x3   :  { %105 = vrcp.f32 %v137_v3  ;;  %103 = vset.pattern.permute.xlu1 %v138_v5  ;;  %104 = vset.pattern.permute.xlu0 %v138_v5  ;;  %v74_v8 = vld [vmem:[%s177_s2] sm:$0xff]  ;;  %s89_s1 = sshll.u32 %s139_s0, 4  ;;  %s91_s21 = sshll.u32 %s178_s3, 4  ;;  %s90_s1 = int_to_ptr.vmem [resolvable:$true] %s89_s1  ;;  %s92_s21 = int_to_ptr.hbm [resolvable:$true] %s91_s21 }
   0x4   :  { %18 = vadd.xlane.f32.xlu0 %v17_v2  ;;  %69 = vperm.xlu1 %103, %v66_v4  }
   0x9   :  { %v106_v6 = vpop.eup %105 }
   0xa   :  { %v21_v7 = vmul.f32 256.0, %v106_v6  ;;  %vm25_vm0 = vweird.f32 %v106_v6 }
   0xc   :  { %v22_v9 = vsub.f32 1.0, %v21_v7  ;;  %77 = vperm.xlu1 %103, %v74_v8  }
   0xe   :  { %v23_v10 = vmul.f32 %v106_v6, %v22_v9 }
  0x10   :  { %v24_v11 = vadd.f32 %v106_v6, %v23_v10 }
  0x12   :  { %v26_v12 = vsel %vm25_vm0, %v106_v6, %v24_v11 }
  0x76   :  { %v70_v36 = vpop.permute.xlu1 %69 }
  0x77   :  { %v19_v13 = vpop.xlane.xlu0 %18 }
  0x78   :  { %v27_v14 = vmul.f32 %v26_v12, %v19_v13 }
  0x7a   :  { %v28_v15 = vsub.f32 %v15_v0, %v27_v14  ;;  %v29_v16 = vsub.f32 %v16_v1, %v27_v14 }
  0x7c   :  { %v30_v17 = vmul.f32 %v28_v15, %v28_v15  ;;  %v31_v18 = vmul.f32 %v29_v16, %v29_v16 }
  0x7e   :  { %v32_v19 = vadd.f32 %v31_v18, %v30_v17  ;;  %v78_v48 = vpop.permute.xlu1 %77 }
  0x80   :  { %33 = vadd.xlane.f32.xlu0 %v32_v19 }
  0xf3   :  { %v34_v20 = vpop.xlane.xlu0 %33 }
  0xf4   :  { %v35_v21 = vmul.f32 0.003921569, %v34_v20 }
  0xf6   :  { %107 = vrsqrt.f32 %v35_v21  ;;  %vm43_vm1 = vcmp.eq.f32.partialorder %v35_v21, inf  ;;  %v46_v29 = vand.u32 2147483648, %v35_v21  ;;  %vm45_vm2 = vcmp.eq.f32.partialorder %v35_v21, 0.0 }
  0xfc   :  { %v108_v22 = vpop.eup %107 }
  0xfd   :  { %v37_v23 = vmul.f32 %v108_v22, %v35_v21 }
  0xff   :  { %v38_v24 = vmul.f32 %v108_v22, %v37_v23 }
 0x101   :  { %v39_v25 = vmul.f32 0.5, %v38_v24 }
 0x103   :  { %v40_v26 = vsub.f32 1.5, %v39_v25 }
 0x105   :  { %v41_v27 = vmul.f32 %v108_v22, %v40_v26 }
 0x107   :  { %v42_v28 = vmul.f32 %v41_v27, %v35_v21 }
 0x109   :  { %v44_v30 = vsel %vm43_vm1, %v35_v21, %v42_v28 }
 0x10a   :  { %v47_v31 = vsel %vm45_vm2, %v46_v29, %v44_v30 }
 0x10b   :  { %v48_v32 = vadd.f32 1e-05, %v47_v31 }
 0x10d   :  { %109 = vrcp.f32 %v48_v32  ;;  %v60_v37 = vand.u32 2147483648, %v48_v32  ;;  %v58_v39 = vand.u32 2147483647, %v48_v32  ;;  %vm54_vm4 = vweird.f32 %v48_v32 }
 0x10f   :  { %v61_v41 = vor.u32 1.1754944e-38, %v60_v37  ;;  %vm59_vm6 = vcmp.eq.f32.partialorder %v58_v39, 8.507059e+37 }
 0x113   :  { %v110_v33 = vpop.eup %109 }
 0x114   :  { %v50_v34 = vmul.f32 %v110_v33, %v48_v32  ;;  %vm55_vm3 = vweird.f32 %v110_v33 }
 0x115   :  { %vm56_vm5 = vmor %vm54_vm4, %vm55_vm3 }
 0x116   :  { %v51_v35 = vsub.f32 1.0, %v50_v34 }
 0x118   :  { %v52_v38 = vmul.f32 %v110_v33, %v51_v35 }
 0x11a   :  { %v53_v40 = vadd.f32 %v110_v33, %v52_v38 }
 0x11c   :  { %v57_v42 = vsel %vm56_vm5, %v110_v33, %v53_v40 }
 0x11d   :  { %v62_v43 = vsel %vm59_vm6, %v61_v41, %v57_v42 }
 0x11e   :  { %v64_v44 = vmul.f32 %v62_v43, %v28_v15  ;;  %v65_v45 = vmul.f32 %v62_v43, %v29_v16 }
 0x120   :  { %v72_v46 = vmul.f32 %v70_v36, %v64_v44  ;;  %v73_v47 = vmul.f32 %v70_v36, %v65_v45 }
 0x122   :  { %v80_v49 = vadd.f32 %v78_v48, %v72_v46  ;;  %v81_v50 = vadd.f32 %v78_v48, %v73_v47 }
 0x124   :  { %82 = vst [vmem:[#allocation2] sm:$0xff] %v80_v49 }
 0x125   :  { %83 = vst [vmem:[#allocation2 + $0x8] sm:$0xff] %v81_v50 }
 0x126   :  { %94 = dma.vmem_to_hbm [thread:$0]  %s90_s1, 256, %s92_s21, [#allocation3]  }
 0x127   :  { %135 = dma.done.wait [#allocation3], 256  }
 0x128   :  { %136 = vsyncadd [#allocation3], 4294967040 }
 0x129   :  { %99 = vsyncpa [#allocation3], 1 }

</bundles_post_ra>
